<compile_context>
chip_gen: v6e
topology: v6e:2x2x1
jax: 0.10.0
libtpu: 0.0.40
codegen_flags: <defaults>
</compile_context>

<pallas_src>
import jax
import jax.numpy as jnp
from jax.experimental import pallas as pl
from jax.experimental.pallas import tpu as pltpu


def policy_net_kernel(x_ref, w1_ref, b1_ref, w2_ref, b2_ref, out_ref):
    # ---- fc1 + ReLU (MXU matmul + VPU elementwise), math in f32 ----
    x = x_ref[...].astype(jnp.float32)                       # (TB, S)
    h = jnp.dot(x, w1_ref[...].astype(jnp.float32),
                preferred_element_type=jnp.float32)          # (TB, H)
    h = jnp.maximum(h + b1_ref[...].astype(jnp.float32), 0.0)

    # ---- fc2 ----
    logits = jnp.dot(h, w2_ref[...].astype(jnp.float32),
                     preferred_element_type=jnp.float32)     # (TB, A)
    logits = logits + b2_ref[...].astype(jnp.float32)

    # ---- softmax over dim=1 (last axis), numerically stable, exact norm ----
    m = jnp.max(logits, axis=-1, keepdims=True)
    e = jnp.exp(logits - m)
    denom = jnp.sum(e, axis=-1, keepdims=True)
    out_ref[...] = (e / denom).astype(out_ref.dtype)


def policy_net_forward(state, w1, b1, w2, b2, *, block_b=2048):
    """state: (B, S); w1: (S, H); b1: (H,); w2: (H, A); b2: (A,).

    Output has the same dtype as `state` (feed bf16 on v5e/v6e to cut HBM
    traffic; compute inside the kernel is f32 either way).
    """
    B, S = state.shape
    H = w1.shape[1]
    A = w2.shape[1]

    def round_up(x, m):
        return ((x + m - 1) // m) * m

    # Batch tile: multiple of 8 (sublane tile), capped at block_b, and sized so
    # the grid has >=2 steps when B allows (feeds both TensorCores on v7x).
    # The last block may be ragged; Pallas masks out-of-bounds rows.
    tb = min(block_b, max(8, round_up(pl.cdiv(B, 2), 8)))
    grid = (pl.cdiv(B, tb),)

    out = pl.pallas_call(
        policy_net_kernel,
        out_shape=jax.ShapeDtypeStruct((B, A), state.dtype),
        grid_spec=pltpu.PrefetchScalarGridSpec(
            num_scalar_prefetch=0,
            grid=grid,
            in_specs=[
                pl.BlockSpec((tb, S), lambda i: (i, 0)),   # activations: streamed
                pl.BlockSpec((S, H), lambda i: (0, 0)),    # weights: VMEM-resident
                pl.BlockSpec((1, H), lambda i: (0, 0)),
                pl.BlockSpec((H, A), lambda i: (0, 0)),
                pl.BlockSpec((1, A), lambda i: (0, 0)),
            ],
            out_specs=pl.BlockSpec((tb, A), lambda i: (i, 0)),
        ),
        compiler_params=pltpu.CompilerParams(
            # Batch axis is independent per step -> parallel (megacore on v7x).
            dimension_semantics=("parallel",)),
    )(state, w1, b1.reshape(1, H), w2, b2.reshape(1, A))
    return out


def init_policy_net_params(key, state_dim, hidden_dim, action_dim):
    """Deterministic init mimicking nn.Linear's U(-1/sqrt(fan_in), 1/sqrt(fan_in))."""
    k1, k2, k3, k4 = jax.random.split(key, 4)
    bound1 = 1.0 / jnp.sqrt(jnp.float32(state_dim))
    bound2 = 1.0 / jnp.sqrt(jnp.float32(hidden_dim))
    # Stored as (in_features, out_features) == transpose of PyTorch's weight.
    w1 = jax.random.uniform(k1, (state_dim, hidden_dim), jnp.float32, -bound1, bound1)
    b1 = jax.random.uniform(k2, (hidden_dim,), jnp.float32, -bound1, bound1)
    w2 = jax.random.uniform(k3, (hidden_dim, action_dim), jnp.float32, -bound2, bound2)
    b2 = jax.random.uniform(k4, (action_dim,), jnp.float32, -bound2, bound2)
    return w1, b1, w2, b2


def _reference(state, w1, b1, w2, b2):
    h = jnp.maximum(state @ w1 + b1, 0.0)
    return jax.nn.softmax(h @ w2 + b2, axis=1)


if __name__ == "__main__":
    # Small shapes consistent with PolicyNet(state_dim, hidden_dim, action_dim).
    state_dim, hidden_dim, action_dim = 4, 32, 8

    key = jax.random.PRNGKey(0)
    k_params, k_small, k_ragged, k_big = jax.random.split(key, 4)
    w1, b1, w2, b2 = init_policy_net_params(k_params, state_dim, hidden_dim, action_dim)

    def check(batch, k):
        state = jax.random.normal(k, (batch, state_dim), jnp.float32)
        probs = jax.block_until_ready(policy_net_forward(state, w1, b1, w2, b2))
        ref = _reference(state, w1, b1, w2, b2)
        assert probs.shape == (batch, action_dim)
        assert jnp.allclose(probs, ref, atol=2e-3, rtol=2e-3), f"mismatch vs reference at B={batch}"
        assert jnp.allclose(jnp.sum(probs, axis=1), 1.0, atol=1e-5), f"rows not normalized at B={batch}"

    # --- small-batch case (B=2: single partial block, no padding pass) ---
    check(2, k_small)
    # --- ragged multi-step case (B=600: two grid steps, tb=304, masked tail) ---
    check(600, k_ragged)
    # --- large case (B=4096: two full steps at tb=2048, resident weights reused) ---
    check(4096, k_big)

    print("KERNEL_OK")
</pallas_src>

<mosaic_0001>
module attributes {stable_mosaic.version = 11 : i64} {
  func.func @policy_net_kernel(%arg0: i32, %arg1: memref<8x4xf32, #tpu.memory_space<vmem>>, %arg2: memref<4x32xf32, #tpu.memory_space<vmem>>, %arg3: memref<1x32xf32, #tpu.memory_space<vmem>>, %arg4: memref<32x8xf32, #tpu.memory_space<vmem>>, %arg5: memref<1x8xf32, #tpu.memory_space<vmem>>, %arg6: memref<8x8xf32, #tpu.memory_space<vmem>>) attributes {dimension_semantics = [#tpu.dimension_semantics<parallel>], iteration_bounds = array<i64: 1>, scalar_prefetch = 0 : i64, scratch_operands = 0 : i64, tpu.core_type = #tpu.core_type<tc>, window_params = [{transform_indices = @transform_0, window_bounds = array<i64: 8, 4>}, {pipeline_mode = #tpu.pipeline_mode<synchronous>, transform_indices = @transform_1, window_bounds = array<i64: 4, 32>}, {pipeline_mode = #tpu.pipeline_mode<synchronous>, transform_indices = @transform_2, window_bounds = array<i64: 1, 32>}, {pipeline_mode = #tpu.pipeline_mode<synchronous>, transform_indices = @transform_3, window_bounds = array<i64: 32, 8>}, {pipeline_mode = #tpu.pipeline_mode<synchronous>, transform_indices = @transform_4, window_bounds = array<i64: 1, 8>}, {transform_indices = @transform_5, window_bounds = array<i64: 8, 8>}]} {
    %c0 = arith.constant 0 : index
    %c0_0 = arith.constant 0 : index
    %0 = vector.load %arg1[%c0, %c0_0] : memref<8x4xf32, #tpu.memory_space<vmem>>, vector<8x4xf32>
    %c0_1 = arith.constant 0 : index
    %c0_2 = arith.constant 0 : index
    %1 = vector.load %arg2[%c0_1, %c0_2] : memref<4x32xf32, #tpu.memory_space<vmem>>, vector<4x32xf32>
    %cst = arith.constant dense<0.000000e+00> : vector<8x32xf32>
    %2 = tpu.matmul %0, %1, %cst {dimension_numbers = #tpu.dot_dimension_numbers<[1], [0], [0], [1], [0, 0, 1, 1], [], []>} : vector<8x4xf32>, vector<4x32xf32>, vector<8x32xf32> -> vector<8x32xf32>
    %c0_3 = arith.constant 0 : index
    %c0_4 = arith.constant 0 : index
    %3 = vector.load %arg3[%c0_3, %c0_4] : memref<1x32xf32, #tpu.memory_space<vmem>>, vector<1x32xf32>
    %4 = vector.broadcast %3 : vector<1x32xf32> to vector<8x32xf32>
    %5 = arith.addf %2, %4 : vector<8x32xf32>
    %cst_5 = arith.constant 0.000000e+00 : f32
    %6 = vector.broadcast %cst_5 : f32 to vector<8x32xf32>
    %7 = arith.maximumf %5, %6 : vector<8x32xf32>
    %c0_6 = arith.constant 0 : index
    %c0_7 = arith.constant 0 : index
    %8 = vector.load %arg4[%c0_6, %c0_7] : memref<32x8xf32, #tpu.memory_space<vmem>>, vector<32x8xf32>
    %cst_8 = arith.constant dense<0.000000e+00> : vector<8x8xf32>
    %9 = tpu.matmul %7, %8, %cst_8 {dimension_numbers = #tpu.dot_dimension_numbers<[1], [0], [0], [1], [0, 0, 1, 1], [], []>} : vector<8x32xf32>, vector<32x8xf32>, vector<8x8xf32> -> vector<8x8xf32>
    %c0_9 = arith.constant 0 : index
    %c0_10 = arith.constant 0 : index
    %10 = vector.load %arg5[%c0_9, %c0_10] : memref<1x8xf32, #tpu.memory_space<vmem>>, vector<1x8xf32>
    %11 = vector.broadcast %10 : vector<1x8xf32> to vector<8x8xf32>
    %12 = arith.addf %9, %11 : vector<8x8xf32>
    %cst_11 = arith.constant dense<0xFF800000> : vector<8xf32>
    %13 = vector.multi_reduction <maximumf>, %12, %cst_11 [1] : vector<8x8xf32> to vector<8xf32>
    %14 = vector.shape_cast %13 : vector<8xf32> to vector<8x1xf32>
    %15 = vector.broadcast %14 : vector<8x1xf32> to vector<8x8xf32>
    %16 = arith.subf %12, %15 : vector<8x8xf32>
    %17 = math.exp %16 : vector<8x8xf32>
    %cst_12 = arith.constant dense<0.000000e+00> : vector<8xf32>
    %18 = vector.multi_reduction <add>, %17, %cst_12 [1] : vector<8x8xf32> to vector<8xf32>
    %19 = vector.shape_cast %18 : vector<8xf32> to vector<8x1xf32>
    %20 = vector.broadcast %19 : vector<8x1xf32> to vector<8x8xf32>
    %21 = arith.divf %17, %20 : vector<8x8xf32>
    %c0_13 = arith.constant 0 : index
    %c0_14 = arith.constant 0 : index
    %22 = vector.load %arg6[%c0_13, %c0_14] : memref<8x8xf32, #tpu.memory_space<vmem>>, vector<8x8xf32>
    tpu.vector_store %arg6[%c0_13, %c0_14], %21 {strides = array<i32>} : memref<8x8xf32, #tpu.memory_space<vmem>>, vector<8x8xf32>,
    return
  }
  func.func @transform_0(%arg0: i32) -> (i32, i32) {
    %c0_i32 = arith.constant 0 : i32
    %c0_i32_0 = arith.constant 0 : i32
    return %arg0, %c0_i32 : i32, i32
  }
  func.func @transform_1(%arg0: i32) -> (i32, i32) {
    %c0_i32 = arith.constant 0 : i32
    %c0_i32_0 = arith.constant 0 : i32
    %c0_i32_1 = arith.constant 0 : i32
    return %c0_i32, %c0_i32_0 : i32, i32
  }
  func.func @transform_2(%arg0: i32) -> (i32, i32) {
    %c0_i32 = arith.constant 0 : i32
    %c0_i32_0 = arith.constant 0 : i32
    %c0_i32_1 = arith.constant 0 : i32
    return %c0_i32, %c0_i32_0 : i32, i32
  }
  func.func @transform_3(%arg0: i32) -> (i32, i32) {
    %c0_i32 = arith.constant 0 : i32
    %c0_i32_0 = arith.constant 0 : i32
    %c0_i32_1 = arith.constant 0 : i32
    return %c0_i32, %c0_i32_0 : i32, i32
  }
  func.func @transform_4(%arg0: i32) -> (i32, i32) {
    %c0_i32 = arith.constant 0 : i32
    %c0_i32_0 = arith.constant 0 : i32
    %c0_i32_1 = arith.constant 0 : i32
    return %c0_i32, %c0_i32_0 : i32, i32
  }
  func.func @transform_5(%arg0: i32) -> (i32, i32) {
    %c0_i32 = arith.constant 0 : i32
    %c0_i32_0 = arith.constant 0 : i32
    return %arg0, %c0_i32 : i32, i32
  }
}

</mosaic_0001>

<bundles_post_ra>
// kernel: tpu_custom_call.1
= control target key start
LH: loop header
LB: loop body
LE: loop exit
PB: predicated region body
PF: predicated region fallthrough
CT: control target
= control target key end

     0   :  { %10 = vsyncpa [#allocation3], 0  ;;  %vm34_vm0 = vcmask 1043456   ;;  %v282_v1 = vmov 0.0   ;;  %vm30_vm1 = vcmask 31744   ;;  %vm283_vm2 = vmmov 0   ;;  %s347_s0 = inlined_call_operand.vmem [shape: f32[2,4], index: 0, kind: input, shape index: {}]   ;;  %s348_s1 = inlined_call_operand.vmem [shape: f32[4,32], index: 1, kind: input, shape index: {}]   ;;  %s349_s2 = inlined_call_operand.vmem [shape: f32[1,32], index: 2, kind: input, shape index: {}]   ;;  %s350_s3 = inlined_call_operand.vmem [shape: f32[32,8], index: 3, kind: input, shape index: {}]   ;;  %s351_s4 = inlined_call_operand.vmem [shape: f32[1,8], index: 4, kind: input, shape index: {}]   ;;  %s352_s5 = inlined_call_operand.hbm [shape: f32[2,8], index: 5, kind: output, shape index: {}]  }
   0x1   :  { %v22_v0 = vld [vmem:[%s348_s1] sm:$0xf]  ;;  %235 = vmatprep.subr.mxu0 %v282_v1  ;;  %240 = vmatprep.subr.mxu1 %v282_v1  ;;  %v112_v3 = vld [vmem:[%s350_s3 + $0x18] sm:$0xff]  ;;  %v111_v4 = vld [vmem:[%s350_s3 + $0x10] sm:$0xff]  ;;  %vm120_vm3 = vcmask 261120   ;;  %vm194_vm4 = vcmask 64512  }
   0x2   :  { %v21_v2 = vld [vmem:[%s347_s0] sm:$0xff]  ;;  %236 = vmatpush3.msk.msra.mxu0 %vm34_vm0, %v22_v0  ;;  %237 = vmatprep.mubr.msk.f32.mxu0 %vm283_vm2, %v282_v1  ;;  %v110_v5 = vld [vmem:[%s350_s3 + $0x8] sm:$0xff] }
   0x3   :  { %238 = vmatmul.mubr.msk.f32.vlgmr.msra.gmra.mxu0 %vm30_vm1, %v21_v2  ;;  %241 = vmatpush3.msra.mxu1 %v112_v3  ;;  %v109_v6 = vld [vmem:[%s350_s3] sm:$0xff] }
   0x4   :  { %242 = vmatprep.subr.mxu1 %v282_v1  ;;  %248 = vmatprep.mubr.msk.f32.mxu1 %vm283_vm2, %v282_v1  ;;  %v223_v7 = vld [vmem:[%s349_s2] ss:$0 sm:$0xff] }
   0x5   :  { %243 = vmatpush3.msra.mxu1 %v111_v4  ;;  %v226_v12 = vld [vmem:[%s351_s4] ss:$0 sm:$0xff] }
   0x6   :  { %244 = vmatprep.subr.mxu1 %v282_v1 }
   0x7   :  { %245 = vmatpush3.msra.mxu1 %v110_v5 }
   0x8   :  { %246 = vmatprep.subr.mxu1 %v282_v1 }
   0x9   :  { %247 = vmatpush3.msra.mxu1 %v109_v6 }
  0xc3   :  { %v104_v8 = vpop.f32.mrf.mxu0 }
  0xc4   :  { %v105_v9 = vadd.f32 %v223_v7, %v104_v8 }
  0xc5   :  { %v239_v10 = vpop.f32.mrf.mxu0 }
  0xc6   :  { %v108_v11 = vmax.f32 %v105_v9, 0.0 }
  0xc8   :  { %249 = vmatmul.mubr.msk.f32.vlgmr.msra.gmra.mxu1 %vm120_vm3, %v108_v11 }
 0x188   :  { %v190_v13 = vpop.f32.mrf.mxu1 }
 0x189   :  { %v191_v14 = vadd.f32 %v226_v12, %v190_v13 }
 0x18a   :  { %v250_v15 = vpop.f32.mrf.mxu1 }
 0x18b   :  { %v195_v16 = vsel %vm194_vm4, %v191_v14, -inf }
 0x18c   :  { %196 = vmax.xlane.f32.xlu0 %v195_v16 }
 0x215   :  { %v197_v17 = vpop.xlane.xlu0 %196 }
 0x216   :  { %v198_v18 = vsub.f32 %v191_v14, %v197_v17 }
 0x218   :  { %v199_v19 = vmul.f32 1.442695, %v198_v18 }
 0x21a   :  { %256 = vpow2.f32 %v199_v19 }
 0x227   :  { %v257_v20 = vpop.eup %256 }
 0x228   :  { %v201_v21 = vsel %vm194_vm4, %v257_v20, 0.0 }
 0x229   :  { %202 = vadd.xlane.f32.xlu0 %v201_v21 }
 0x2b2   :  { %v203_v22 = vpop.xlane.xlu0 %202 }
 0x2b3   :  { %258 = vrcp.f32 %v203_v22 }
 0x2c0   :  { %v259_v23 = vpop.eup %258 }
 0x2c1   :  { %v205_v24 = vmul.f32 %v259_v23, %v257_v20 }
 0x2c3   :  { %206 = vst.msk [vmem:[#allocation2] sm:$0xff] %vm194_vm4, %v205_v24 }
 0x2c4   :  { %211 = vsyncadd [#allocation3], 96  ;;  %s284_s2 = smov [#allocation2]  }
 0x2c5   :  { %s212_s3 = sshll.u32 %s284_s2, 4  ;;  %s213_s3 = int_to_ptr.vmem [resolvable:$true] %s212_s3 }
 0x2c6   :  { %s260_s4 = scalar_lea.vmem %s213_s3, 32  ;;  %s264_s7 = scalar_lea.vmem %s213_s3, 128 }
 0x2c7   :  { %p261_p0 = scmp.ne.s32.totalorder %s213_s3, %s260_s4  ;;  %p265_p1 = scmp.lt.s32.totalorder %s213_s3, %s213_s3 }
 0x2c8   :  { %p266_p2 = scmp.lt.s32.totalorder %s264_s7, %s260_s4 }
 0x2ca   :  { %p267_p3 = por %p266_p2, %p265_p1 }
 0x2cc   :  { %p268_p4 = pnand %p267_p3, %p261_p0 }
 0x2ce   :  { %271 = shalt.err (!%p268_p4)
}
 0x2cf   :  { %s285_s8 = smov 32   ;;  %s286_s9 = smov 2  }
 0x2d0   :  { %218 = dma.vmem_to_hbm [thread:$0]  %s213_s3, 32, %s352_s5, [#allocation3], %s285_s8, %s285_s8, %s286_s9  }
 0x2d1   :  { %280 = dma.done.wait [#allocation3], 128  }
 0x2d2   :  { %281 = vsyncadd [#allocation3], 4294967168 }
 0x2d3   :  { %222 = vsyncpa [#allocation3], 1 }

</bundles_post_ra>
